<compile_context>
chip_gen: v7x
topology: tpu7x:2x2x1
jax: 0.10.0
libtpu: 0.0.40
codegen_flags: <defaults>
</compile_context>

<pallas_src>
import jax
import jax.numpy as jnp
from jax.experimental import pallas as pl
from jax.experimental.pallas import tpu as pltpu


# ------------------------------ helpers ------------------------------------

def _largest_divisor(n, target):
    """Largest divisor of n that is <= target (>= 1)."""
    t = max(1, min(int(target), int(n)))
    for d in range(t, 0, -1):
        if n % d == 0:
            return d
    return 1


# --------------------------- 1x1 conv kernel --------------------------------

def _pw_kernel(x_ref, w_ref, b_ref, o_ref):
    # 1x1 conv == channel matmul; BN scale is pre-folded into w, so only +bias.
    y = jnp.dot(x_ref[...], w_ref[...], preferred_element_type=jnp.float32)
    y = y + b_ref[...]
    o_ref[...] = y * jax.nn.sigmoid(y)          # SiLU


def pw_conv_bias_silu(x2d, w, bias, tm_target=512):
    M, cin = x2d.shape
    cout = w.shape[1]
    tm = _largest_divisor(M, tm_target)
    grid = (M // tm,)
    return pl.pallas_call(
        _pw_kernel,
        out_shape=jax.ShapeDtypeStruct((M, cout), jnp.float32),
        grid_spec=pltpu.PrefetchScalarGridSpec(
            num_scalar_prefetch=0,
            grid=grid,
            in_specs=[
                pl.BlockSpec((tm, cin), lambda i: (i, 0)),
                pl.BlockSpec((cin, cout), lambda i: (0, 0)),
                pl.BlockSpec((1, cout), lambda i: (0, 0)),
            ],
            out_specs=pl.BlockSpec((tm, cout), lambda i: (i, 0)),
        ),
        compiler_params=pltpu.CompilerParams(dimension_semantics=("parallel",)),
    )(x2d, w, bias)


# ----------------------- attention scale kernel -----------------------------
# Produces only the per-batch (1, C) high/low channel scales; the full-size
# high/low activations are reconstructed on the fly by the consumers.

def attention_scales(y1_flat, w1, w2, hw_target=512):
    B, HW, C = y1_flat.shape
    Cr = w1.shape[1]
    thw = _largest_divisor(HW, hw_target)
    nj = HW // thw

    def kernel(y_ref, w1_ref, w2_ref, hs_ref, ls_ref, acc_ref):
        j = pl.program_id(1)

        @pl.when(j == 0)
        def _():
            acc_ref[...] = jnp.zeros_like(acc_ref)

        acc_ref[...] += jnp.sum(y_ref[...], axis=0, keepdims=True)

        @pl.when(j == nj - 1)
        def _():
            gap = acc_ref[...] * (1.0 / HW)                                    # (1, C)
            h = jnp.maximum(
                jnp.dot(gap, w1_ref[...], preferred_element_type=jnp.float32), 0.0)
            aw = jax.nn.sigmoid(
                jnp.dot(h, w2_ref[...], preferred_element_type=jnp.float32))   # (1, C)
            thr = jnp.sum(aw, axis=1, keepdims=True) * (1.0 / C)
            mask = (aw >= thr).astype(jnp.float32)
            hs_ref[...] = aw * mask
            ls_ref[...] = aw * (1.0 - mask)

    return pl.pallas_call(
        kernel,
        out_shape=(jax.ShapeDtypeStruct((B, 1, C), jnp.float32),
                   jax.ShapeDtypeStruct((B, 1, C), jnp.float32)),
        grid_spec=pltpu.PrefetchScalarGridSpec(
            num_scalar_prefetch=0,
            grid=(B, nj),
            in_specs=[
                pl.BlockSpec((pl.Squeezed(), thw, C), lambda b, j: (b, j, 0)),
                pl.BlockSpec((C, Cr), lambda b, j: (0, 0)),
                pl.BlockSpec((Cr, C), lambda b, j: (0, 0)),
            ],
            out_specs=[
                pl.BlockSpec((pl.Squeezed(), 1, C), lambda b, j: (b, 0, 0)),
                pl.BlockSpec((pl.Squeezed(), 1, C), lambda b, j: (b, 0, 0)),
            ],
            scratch_shapes=[pltpu.VMEM((1, C), jnp.float32)],
        ),
        compiler_params=pltpu.CompilerParams(
            dimension_semantics=("parallel", "arbitrary")),
    )(y1_flat, w1, w2)


# -------------------- 3x3 conv (halo-tiled, single matmul) ------------------

def conv3_bias_silu(x_nhwc, w_flat, bias, in_scale=None, row_target=512):
    """3x3 conv (pad=1, stride=1) + bias + SiLU.

    x_nhwc:   (B, H, W, cin) activation (unscaled).
    w_flat:   (9*cin, cout) weights with BN scale folded (tap-major rows).
    in_scale: optional (B, 1, cin) per-channel input scale applied in-kernel
              (used to fuse `high = y1 * hi_scale` so `high` is never stored).
    """
    B, H, W, cin = x_nhwc.shape
    cout = w_flat.shape[1]
    th = _largest_divisor(H, max(1, row_target // max(W, 1)))
    n_row = H // th
    have_scale = in_scale is not None

    # Single padded copy in HBM; the kernel DMAs overlapping row halos from it.
    xp = jnp.pad(x_nhwc, ((0, 0), (1, 1), (1, 1), (0, 0)))

    def kernel(*refs):
        if have_scale:
            xpad_hbm, s_ref, w_ref, b_ref, o_ref, xbuf, sem = refs
        else:
            xpad_hbm, w_ref, b_ref, o_ref, xbuf, sem = refs
            s_ref = None
        b = pl.program_id(0)
        i = pl.program_id(1)
        r0 = pl.multiple_of(i * th, th)

        # Manual halo DMA: rows [r0, r0+th+2) of the padded image for batch b.
        cp = pltpu.make_async_copy(xpad_hbm.at[b, pl.ds(r0, th + 2)], xbuf, sem)
        cp.start()
        cp.wait()

        x = xbuf[...]                                   # (th+2, W+2, cin)
        if s_ref is not None:
            x = x * s_ref[...]                          # fused per-channel scale
        m = th * W
        # im2col in VMEM: 9 shifted views concatenated along channels -> one
        # MXU matmul with K = 9*cin (instead of 9 short-K matmuls).
        patches = jnp.concatenate(
            [x[dy:dy + th, dx:dx + W, :].reshape(m, cin)
             for dy in range(3) for dx in range(3)], axis=-1)     # (m, 9*cin)
        y = jnp.dot(patches, w_ref[...], preferred_element_type=jnp.float32)
        y = y + b_ref[...]
        o_ref[...] = (y * jax.nn.sigmoid(y)).reshape(th, W, cout)

    in_specs = [pl.BlockSpec(memory_space=pl.ANY)]      # padded activation stays in HBM
    args = [xp]
    if have_scale:
        in_specs.append(pl.BlockSpec((pl.Squeezed(), 1, cin), lambda b, i: (b, 0, 0)))
        args.append(in_scale)
    in_specs += [
        pl.BlockSpec((9 * cin, cout), lambda b, i: (0, 0)),
        pl.BlockSpec((1, cout), lambda b, i: (0, 0)),
    ]
    args += [w_flat, bias]

    return pl.pallas_call(
        kernel,
        out_shape=jax.ShapeDtypeStruct((B, H, W, cout), jnp.float32),
        grid_spec=pltpu.PrefetchScalarGridSpec(
            num_scalar_prefetch=0,
            grid=(B, n_row),
            in_specs=in_specs,
            out_specs=pl.BlockSpec((pl.Squeezed(), th, W, cout),
                                   lambda b, i: (b, i, 0, 0)),
            scratch_shapes=[
                pltpu.VMEM((th + 2, W + 2, cin), jnp.float32),
                pltpu.SemaphoreType.DMA(()),
            ],
        ),
        compiler_params=pltpu.CompilerParams(
            dimension_semantics=("parallel", "parallel")),
    )(*args)


# ------------------------ fused concat + cv2 kernel --------------------------
# cv2(cat([low, high, y2])) without materializing low/high/cat:
#   low = y1*lo_scale, high = y1*hi_scale are formed per tile in VMEM and the
#   three (cc, c2) weight slabs are accumulated into one f32 accumulator.

def cv2_fused(y1_flat, y2_flat, hi_s, lo_s, w_lo, w_hi, w_y2, bias, hw_target=512):
    B, HW, cc = y1_flat.shape
    c2 = w_lo.shape[1]
    thw = _largest_divisor(HW, hw_target)

    def kernel(y1_ref, y2_ref, hs_ref, ls_ref, wl_ref, wh_ref, wy_ref, b_ref, o_ref):
        y1 = y1_ref[...]                                            # (thw, cc)
        acc = jnp.dot(y1 * ls_ref[...], wl_ref[...],
                      preferred_element_type=jnp.float32)
        acc = acc + jnp.dot(y1 * hs_ref[...], wh_ref[...],
                            preferred_element_type=jnp.float32)
        acc = acc + jnp.dot(y2_ref[...], wy_ref[...],
                            preferred_element_type=jnp.float32)
        y = acc + b_ref[...]
        o_ref[...] = y * jax.nn.sigmoid(y)

    return pl.pallas_call(
        kernel,
        out_shape=jax.ShapeDtypeStruct((B, HW, c2), jnp.float32),
        grid_spec=pltpu.PrefetchScalarGridSpec(
            num_scalar_prefetch=0,
            grid=(B, HW // thw),
            in_specs=[
                pl.BlockSpec((pl.Squeezed(), thw, cc), lambda b, j: (b, j, 0)),
                pl.BlockSpec((pl.Squeezed(), thw, cc), lambda b, j: (b, j, 0)),
                pl.BlockSpec((pl.Squeezed(), 1, cc), lambda b, j: (b, 0, 0)),
                pl.BlockSpec((pl.Squeezed(), 1, cc), lambda b, j: (b, 0, 0)),
                pl.BlockSpec((cc, c2), lambda b, j: (0, 0)),
                pl.BlockSpec((cc, c2), lambda b, j: (0, 0)),
                pl.BlockSpec((cc, c2), lambda b, j: (0, 0)),
                pl.BlockSpec((1, c2), lambda b, j: (0, 0)),
            ],
            out_specs=pl.BlockSpec((pl.Squeezed(), thw, c2), lambda b, j: (b, j, 0)),
        ),
        compiler_params=pltpu.CompilerParams(
            dimension_semantics=("parallel", "parallel")),
    )(y1_flat, y2_flat, hi_s, lo_s, w_lo, w_hi, w_y2, bias)


# ----------------------------- module wrapper --------------------------------

def c2f_attention_forward(x_nchw, p):
    """C2f_Attention.forward.  x_nchw: (B, c1, H, W) float32 -> (B, c2, H, W)."""
    x = jnp.transpose(x_nchw, (0, 2, 3, 1)).astype(jnp.float32)    # NHWC
    B, H, W, c1 = x.shape
    cc = p["cv1_w"].shape[1]          # 2 * self.c
    c2 = p["cv2_w"].shape[1]
    M, HW = B * H * W, H * W

    # ---- fold BN scale into conv weights (one-time prep; bias stays separate)
    cv1_w = p["cv1_w"] * p["cv1_s"]                                # (c1, cc)
    m1_w = (p["m_cv1_w"] * p["m_cv1_s"]).reshape(9 * cc, cc)       # tap-major
    m2_w = (p["m_cv2_w"] * p["m_cv2_s"]).reshape(9 * cc, cc)
    cv2_wf = p["cv2_w"] * p["cv2_s"]                               # (3cc, c2)
    w_lo, w_hi, w_y2 = cv2_wf[:cc], cv2_wf[cc:2 * cc], cv2_wf[2 * cc:]

    # ---- y1 = cv1(x)  (1x1 conv + BN + SiLU), tiled over M
    y1 = pw_conv_bias_silu(x.reshape(M, c1), cv1_w, p["cv1_b"]).reshape(B, H, W, cc)

    # ---- attention -> per-batch (1, cc) channel scales only
    hi_s, lo_s = attention_scales(y1.reshape(B, HW, cc), p["fc1_w"], p["fc2_w"])

    # ---- y2 = m[0](high)  (Bottleneck: 3x3 -> 3x3, no shortcut);
    #      high = y1 * hi_s fused into the first conv's input scaling.
    t = conv3_bias_silu(y1, m1_w, p["m_cv1_b"], in_scale=hi_s)
    y2 = conv3_bias_silu(t, m2_w, p["m_cv2_b"], in_scale=None)

    # ---- cv2(cat([low, high, y2])) fused (no concat / low / high in HBM)
    out = cv2_fused(y1.reshape(B, HW, cc), y2.reshape(B, HW, cc),
                    hi_s, lo_s, w_lo, w_hi, w_y2, p["cv2_b"])
    out = out.reshape(B, H, W, c2)
    return jnp.transpose(out, (0, 3, 1, 2))                        # back to NCHW


# ---------------------- deterministic parameter setup ------------------------

def make_params(key, c1, c2):
    c = int(c2 * 0.5)
    cc = 2 * c
    red = 16
    keys = iter(jax.random.split(key, 64))

    def nrm(shape, scl=0.1):
        return (scl * jax.random.normal(next(keys), shape)).astype(jnp.float32)

    def bn_fold(cout, eps=1e-3):
        gamma = 1.0 + 0.1 * jax.random.normal(next(keys), (cout,))
        beta = 0.1 * jax.random.normal(next(keys), (cout,))
        mean = 0.1 * jax.random.normal(next(keys), (cout,))
        var = jnp.abs(jax.random.normal(next(keys), (cout,))) + 0.5
        scale = (gamma / jnp.sqrt(var + eps)).astype(jnp.float32)
        bias = (beta - mean * scale).astype(jnp.float32)
        return scale.reshape(1, cout), bias.reshape(1, cout)

    p = {}
    p["cv1_w"] = nrm((c1, cc))
    p["cv1_s"], p["cv1_b"] = bn_fold(cc)
    p["fc1_w"] = nrm((cc, cc // red))          # Linear(cc, cc//16, bias=False)
    p["fc2_w"] = nrm((cc // red, cc))          # Linear(cc//16, cc, bias=False)
    p["m_cv1_w"] = nrm((9, cc, cc))            # Bottleneck cv1: 3x3, e=1.0
    p["m_cv1_s"], p["m_cv1_b"] = bn_fold(cc)
    p["m_cv2_w"] = nrm((9, cc, cc))            # Bottleneck cv2: 3x3
    p["m_cv2_s"], p["m_cv2_b"] = bn_fold(cc)
    p["cv2_w"] = nrm((3 * cc, c2))             # (2+n)*2c -> c2, n=1
    p["cv2_s"], p["cv2_b"] = bn_fold(c2)
    return p


# ------------------------ pure-JAX reference (check) -------------------------

def reference_forward(x_nchw, p):
    x = jnp.transpose(x_nchw, (0, 2, 3, 1)).astype(jnp.float32)
    silu = lambda v: v * jax.nn.sigmoid(v)
    B, H, W, _ = x.shape
    y1 = silu(jnp.einsum("bhwi,io->bhwo", x, p["cv1_w"])
              * p["cv1_s"][0] + p["cv1_b"][0])
    gap = jnp.mean(y1, axis=(1, 2))
    h = jnp.maximum(gap @ p["fc1_w"], 0.0)
    aw = jax.nn.sigmoid(h @ p["fc2_w"])
    thr = jnp.mean(aw, axis=1, keepdims=True)
    xatt = y1 * aw[:, None, None, :]
    mask = (aw >= thr).astype(jnp.float32)[:, None, None, :]
    high, low = xatt * mask, xatt * (1.0 - mask)

    def conv3(v, w9, s, b):
        vp = jnp.pad(v, ((0, 0), (1, 1), (1, 1), (0, 0)))
        acc = 0.0
        for dy in range(3):
            for dx in range(3):
                acc = acc + jnp.einsum("bhwi,io->bhwo",
                                       vp[:, dy:dy + H, dx:dx + W, :], w9[dy * 3 + dx])
        return silu(acc * s[0] + b[0])

    t = conv3(high, p["m_cv1_w"], p["m_cv1_s"], p["m_cv1_b"])
    y2 = conv3(t, p["m_cv2_w"], p["m_cv2_s"], p["m_cv2_b"])
    cat = jnp.concatenate([low, high, y2], axis=-1)
    out = silu(jnp.einsum("bhwi,io->bhwo", cat, p["cv2_w"])
               * p["cv2_s"][0] + p["cv2_b"][0])
    return jnp.transpose(out, (0, 3, 1, 2))


# ----------------------------------- main ------------------------------------

if __name__ == "__main__":
    # Small shapes consistent with the module (reduction=16 requires 2*c >= 16),
    # chosen so every kernel runs with a multi-step grid (exercises the tiling).
    B, C1, C2, H, W = 2, 16, 32, 32, 32
    key = jax.random.PRNGKey(0)
    kx, kp = jax.random.split(key)
    x = jax.random.normal(kx, (B, C1, H, W), dtype=jnp.float32)   # NCHW like PyTorch
    params = make_params(kp, C1, C2)

    out = jax.block_until_ready(c2f_attention_forward(x, params))
    ref = jax.block_until_ready(reference_forward(x, params))

    assert out.shape == (B, C2, H, W), out.shape
    max_err = float(jnp.max(jnp.abs(out - ref)))
    assert jnp.allclose(out, ref, rtol=2e-3, atol=2e-3), max_err
    print("KERNEL_OK")
</pallas_src>

<mosaic_0001>
module attributes {stable_mosaic.version = 11 : i64} {
  func.func @_pw_kernel(%arg0: i32, %arg1: memref<512x16xf32, #tpu.memory_space<vmem>>, %arg2: memref<16x32xf32, #tpu.memory_space<vmem>>, %arg3: memref<1x32xf32, #tpu.memory_space<vmem>>, %arg4: memref<512x32xf32, #tpu.memory_space<vmem>>) attributes {dimension_semantics = [#tpu.dimension_semantics<parallel>], iteration_bounds = array<i64: 4>, scalar_prefetch = 0 : i64, scratch_operands = 0 : i64, tpu.core_type = #tpu.core_type<tc>, window_params = [{transform_indices = @transform_0, window_bounds = array<i64: 512, 16>}, {pipeline_mode = #tpu.pipeline_mode<synchronous>, transform_indices = @transform_1, window_bounds = array<i64: 16, 32>}, {pipeline_mode = #tpu.pipeline_mode<synchronous>, transform_indices = @transform_2, window_bounds = array<i64: 1, 32>}, {transform_indices = @transform_3, window_bounds = array<i64: 512, 32>}]} {
    %c0 = arith.constant 0 : index
    %c0_0 = arith.constant 0 : index
    %0 = vector.load %arg1[%c0, %c0_0] : memref<512x16xf32, #tpu.memory_space<vmem>>, vector<512x16xf32>
    %c0_1 = arith.constant 0 : index
    %c0_2 = arith.constant 0 : index
    %1 = vector.load %arg2[%c0_1, %c0_2] : memref<16x32xf32, #tpu.memory_space<vmem>>, vector<16x32xf32>
    %cst = arith.constant dense<0.000000e+00> : vector<512x32xf32>
    %2 = tpu.matmul %0, %1, %cst {dimension_numbers = #tpu.dot_dimension_numbers<[1], [0], [0], [1], [0, 0, 1, 1], [], []>} : vector<512x16xf32>, vector<16x32xf32>, vector<512x32xf32> -> vector<512x32xf32>
    %c0_3 = arith.constant 0 : index
    %c0_4 = arith.constant 0 : index
    %3 = vector.load %arg3[%c0_3, %c0_4] : memref<1x32xf32, #tpu.memory_space<vmem>>, vector<1x32xf32>
    %4 = vector.broadcast %3 : vector<1x32xf32> to vector<512x32xf32>
    %5 = arith.addf %2, %4 : vector<512x32xf32>
    %6 = arith.negf %5 : vector<512x32xf32>
    %7 = math.exp %6 : vector<512x32xf32>
    %cst_5 = arith.constant 1.000000e+00 : f32
    %8 = vector.broadcast %cst_5 : f32 to vector<512x32xf32>
    %9 = arith.addf %8, %7 : vector<512x32xf32>
    %10 = arith.divf %8, %9 : vector<512x32xf32>
    %11 = arith.mulf %5, %10 : vector<512x32xf32>
    %c0_6 = arith.constant 0 : index
    %c0_7 = arith.constant 0 : index
    %12 = vector.load %arg4[%c0_6, %c0_7] : memref<512x32xf32, #tpu.memory_space<vmem>>, vector<512x32xf32>
    tpu.vector_store %arg4[%c0_6, %c0_7], %11 {strides = array<i32>} : memref<512x32xf32, #tpu.memory_space<vmem>>, vector<512x32xf32>,
    return
  }
  func.func @transform_0(%arg0: i32) -> (i32, i32) {
    %c0_i32 = arith.constant 0 : i32
    %c0_i32_0 = arith.constant 0 : i32
    return %arg0, %c0_i32 : i32, i32
  }
  func.func @transform_1(%arg0: i32) -> (i32, i32) {
    %c0_i32 = arith.constant 0 : i32
    %c0_i32_0 = arith.constant 0 : i32
    %c0_i32_1 = arith.constant 0 : i32
    return %c0_i32, %c0_i32_0 : i32, i32
  }
  func.func @transform_2(%arg0: i32) -> (i32, i32) {
    %c0_i32 = arith.constant 0 : i32
    %c0_i32_0 = arith.constant 0 : i32
    %c0_i32_1 = arith.constant 0 : i32
    return %c0_i32, %c0_i32_0 : i32, i32
  }
  func.func @transform_3(%arg0: i32) -> (i32, i32) {
    %c0_i32 = arith.constant 0 : i32
    %c0_i32_0 = arith.constant 0 : i32
    return %arg0, %c0_i32 : i32, i32
  }
}

</mosaic_0001>

<bundles_post_ra>
// kernel: tpu_custom_call.1
= control target key start
LH: loop header
LB: loop body
LE: loop exit
PB: predicated region body
PF: predicated region fallthrough
CT: control target
= control target key end

     0   :  { %s1998_s12 = smov 0   ;;  %s2676_s0 = inlined_call_operand.vmem [shape: f32[2048,16], index: 0, kind: input, shape index: {}]   ;;  %s2677_s1 = inlined_call_operand.vmem [shape: f32[16,32], index: 1, kind: input, shape index: {}]   ;;  %s2678_s2 = inlined_call_operand.vmem [shape: f32[1,32], index: 2, kind: input, shape index: {}]   ;;  %s2679_s3 = inlined_call_operand.vmem [shape: f32[2048,32], index: 3, kind: output, shape index: {}]  }
   0x1 LB: > { %s1394_s13 = sadd.s32 4294967295, %s1976_s12   ;;  %p1398_p0 = scmp.ge.s32.totalorder %s1976_s12, 1  ;;  %s1976_s12 = sphi %s1998_s12, %s13_s12  }
   0x2   : > { %p138_p1 = scmp.lt.s32.totalorder %s1976_s12, 5 }
   0x4   : > { %p139_p2 = pnand %p1398_p0, %p138_p1 }
   0x5   : > { %v238_v0 = vld [vmem:[%s2677_s1] sm:$0xff] (!%p139_p2)  ;;  %v239_v1 = vld [vmem:[%s2677_s1 + $0x8] sm:$0xff] (!%p139_p2)  ;;  %s1399_s18 = sshll.u32 (!%p139_p2), %s1394_s13, 6  ;;  %vm247_vm0 = vcmask (!%p139_p2), 130048   ;;  %vm1273_vm1 = vcmask (!%p139_p2), 261120  }
   0x6   : > { %142 = sbr.rel (%p139_p2) target bundleno = 377 (0x179), region = 32  ;;  %v1700_v2 = vpack.c.bf16 (!%p139_p2), %v239_v1, %v238_v0  ;;  %p163_p3 = scmp.lt.s32.totalorder (!%p139_p2), %s1399_s18, 255 }
   0x8   : > { %1701 = vmatprep.subr.bf16.mxu0 (!%p139_p2), %v1700_v2  ;;  %1704 = vmatprep.subr.bf16.mxu1 (!%p139_p2), %v1700_v2 }
   0x9   : > { %1703 = vmatpush3.bf16.msra.mxu0 (!%p139_p2), %v1700_v2  ;;  %1705 = vmatpush3.bf16.msra.mxu1 (!%p139_p2), %v1700_v2 }
   0xd   : > { %s2681_s18 = smov (!%p163_p3, %s1399_s18), 255 }
   0xe   : > { %s1400_s19 = sshll.u32 %s2681_s18, 3 }
   0xf   : > { %s2020_s22 = scalar_lea.vmem %s2676_s0, %s1400_s19  ;;  %s2238_s27 = scalar_lea.vmem %s2679_s3, %s1400_s19 }
  0x10   : > { %v174_v3 = vld [vmem:[%s2020_s22] sm:$0xff]  ;;  %v175_v5 = vld [vmem:[%s2020_s22 + $0x8] sm:$0xff]  ;;  %v176_v7 = vld [vmem:[%s2020_s22 + $0x10] sm:$0xff] }
  0x11   : > { %v206_v4 = vld [vmem:[%s2020_s22 + $0x100] sm:$0xff]  ;;  %1604 = vmatprep.mubr.msk.f32.mxu0 %vm247_vm0, %v174_v3  ;;  %v207_v6 = vld [vmem:[%s2020_s22 + $0x108] sm:$0xff]  ;;  %v208_v8 = vld [vmem:[%s2020_s22 + $0x110] sm:$0xff] }
  0x12   : > { %1652 = vmatprep.mubr.msk.f32.mxu1 %vm247_vm0, %v206_v4  ;;  %1605 = vmatmul.mubr.msk.f32.vlgmr.msra.gmra.mrb[0].mxu0 %vm247_vm0, %v175_v5  ;;  %v177_v9 = vld [vmem:[%s2020_s22 + $0x18] sm:$0xff]  ;;  %v178_v11 = vld [vmem:[%s2020_s22 + $0x20] sm:$0xff]  ;;  %v179_v13 = vld [vmem:[%s2020_s22 + $0x28] sm:$0xff] }
  0x13   : > { %1653 = vmatmul.mubr.msk.f32.vlgmr.msra.gmra.mrb[0].mxu1 %vm247_vm0, %v207_v6  ;;  %1607 = vmatprep.mubr.msk.f32.mxu0 %vm247_vm0, %v176_v7  ;;  %v209_v10 = vld [vmem:[%s2020_s22 + $0x118] sm:$0xff]  ;;  %v210_v12 = vld [vmem:[%s2020_s22 + $0x120] sm:$0xff]  ;;  %v211_v14 = vld [vmem:[%s2020_s22 + $0x128] sm:$0xff] }
  0x14   : > { %1655 = vmatprep.mubr.msk.f32.mxu1 %vm247_vm0, %v208_v8  ;;  %v180_v15 = vld [vmem:[%s2020_s22 + $0x30] sm:$0xff]  ;;  %v181_v17 = vld [vmem:[%s2020_s22 + $0x38] sm:$0xff]  ;;  %v182_v19 = vld [vmem:[%s2020_s22 + $0x40] sm:$0xff] }
  0x15   : > { %v212_v16 = vld [vmem:[%s2020_s22 + $0x130] sm:$0xff]  ;;  %v213_v18 = vld [vmem:[%s2020_s22 + $0x138] sm:$0xff]  ;;  %v214_v20 = vld [vmem:[%s2020_s22 + $0x140] sm:$0xff] }
  0x16   : > { %1608 = vmatmul.mubr.msk.f32.gmra.mrb[2].mxu0 %vm247_vm0, %v177_v9  ;;  %v183_v21 = vld [vmem:[%s2020_s22 + $0x48] sm:$0xff]  ;;  %v184_v23 = vld [vmem:[%s2020_s22 + $0x50] sm:$0xff]  ;;  %v185_v25 = vld [vmem:[%s2020_s22 + $0x58] sm:$0xff] }
  0x17   : > { %1656 = vmatmul.mubr.msk.f32.gmra.mrb[2].mxu1 %vm247_vm0, %v209_v10  ;;  %1610 = vmatprep.mubr.msk.f32.mxu0 %vm247_vm0, %v178_v11  ;;  %v215_v22 = vld [vmem:[%s2020_s22 + $0x148] sm:$0xff]  ;;  %v216_v24 = vld [vmem:[%s2020_s22 + $0x150] sm:$0xff]  ;;  %v217_v26 = vld [vmem:[%s2020_s22 + $0x158] sm:$0xff] }
  0x18   : > { %1658 = vmatprep.mubr.msk.f32.mxu1 %vm247_vm0, %v210_v12  ;;  %v186_v27 = vld [vmem:[%s2020_s22 + $0x60] sm:$0xff]  ;;  %v187_v29 = vld [vmem:[%s2020_s22 + $0x68] sm:$0xff]  ;;  %v188_v31 = vld [vmem:[%s2020_s22 + $0x70] sm:$0xff] }
  0x19   : > { %v218_v28 = vld [vmem:[%s2020_s22 + $0x160] sm:$0xff]  ;;  %v219_v30 = vld [vmem:[%s2020_s22 + $0x168] sm:$0xff]  ;;  %v220_v32 = vld [vmem:[%s2020_s22 + $0x170] sm:$0xff] }
  0x1a   : > { %1611 = vmatmul.mubr.msk.f32.gmra.mrb[4].mxu0 %vm247_vm0, %v179_v13  ;;  %v189_v33 = vld [vmem:[%s2020_s22 + $0x78] sm:$0xff]  ;;  %v190_v35 = vld [vmem:[%s2020_s22 + $0x80] sm:$0xff]  ;;  %v191_v37 = vld [vmem:[%s2020_s22 + $0x88] sm:$0xff] }
  0x1b   : > { %1659 = vmatmul.mubr.msk.f32.gmra.mrb[4].mxu1 %vm247_vm0, %v211_v14  ;;  %1613 = vmatprep.mubr.msk.f32.mxu0 %vm247_vm0, %v180_v15  ;;  %v221_v34 = vld [vmem:[%s2020_s22 + $0x178] sm:$0xff]  ;;  %v222_v36 = vld [vmem:[%s2020_s22 + $0x180] sm:$0xff]  ;;  %v223_v38 = vld [vmem:[%s2020_s22 + $0x188] sm:$0xff] }
  0x1c   : > { %1661 = vmatprep.mubr.msk.f32.mxu1 %vm247_vm0, %v212_v16  ;;  %v192_v39 = vld [vmem:[%s2020_s22 + $0x90] sm:$0xff]  ;;  %v193_v41 = vld [vmem:[%s2020_s22 + $0x98] sm:$0xff]  ;;  %v194_v43 = vld [vmem:[%s2020_s22 + $0xa0] sm:$0xff] }
  0x1d   : > { %v224_v40 = vld [vmem:[%s2020_s22 + $0x190] sm:$0xff]  ;;  %v225_v42 = vld [vmem:[%s2020_s22 + $0x198] sm:$0xff]  ;;  %v226_v44 = vld [vmem:[%s2020_s22 + $0x1a0] sm:$0xff] }
  0x1e   : > { %1614 = vmatmul.mubr.msk.f32.gmra.mrb[6].mxu0 %vm247_vm0, %v181_v17  ;;  %v195_v45 = vld [vmem:[%s2020_s22 + $0xa8] sm:$0xff]  ;;  %v196_v47 = vld [vmem:[%s2020_s22 + $0xb0] sm:$0xff]  ;;  %v197_v49 = vld [vmem:[%s2020_s22 + $0xb8] sm:$0xff] }
  0x1f   : > { %1662 = vmatmul.mubr.msk.f32.gmra.mrb[6].mxu1 %vm247_vm0, %v213_v18  ;;  %1616 = vmatprep.mubr.msk.f32.mxu0 %vm247_vm0, %v182_v19  ;;  %v227_v46 = vld [vmem:[%s2020_s22 + $0x1a8] sm:$0xff]  ;;  %v228_v48 = vld [vmem:[%s2020_s22 + $0x1b0] sm:$0xff]  ;;  %v229_v50 = vld [vmem:[%s2020_s22 + $0x1b8] sm:$0xff] }
  0x20   : > { %1664 = vmatprep.mubr.msk.f32.mxu1 %vm247_vm0, %v214_v20  ;;  %v198_v51 = vld [vmem:[%s2020_s22 + $0xc0] sm:$0xff]  ;;  %v199_v53 = vld [vmem:[%s2020_s22 + $0xc8] sm:$0xff]  ;;  %v200_v55 = vld [vmem:[%s2020_s22 + $0xd0] sm:$0xff] }
  0x21   : > { %v230_v52 = vld [vmem:[%s2020_s22 + $0x1c0] sm:$0xff]  ;;  %v231_v54 = vld [vmem:[%s2020_s22 + $0x1c8] sm:$0xff]  ;;  %v232_v56 = vld [vmem:[%s2020_s22 + $0x1d0] sm:$0xff] }
  0x22   : > { %1617 = vmatmul.mubr.msk.f32.gmra.mrb[8].mxu0 %vm247_vm0, %v183_v21  ;;  %v201_v57 = vld [vmem:[%s2020_s22 + $0xd8] sm:$0xff]  ;;  %v202_v59 = vld [vmem:[%s2020_s22 + $0xe0] sm:$0xff]  ;;  %v203_v61 = vld [vmem:[%s2020_s22 + $0xe8] sm:$0xff] }
  0x23   : > { %1665 = vmatmul.mubr.msk.f32.gmra.mrb[8].mxu1 %vm247_vm0, %v215_v22  ;;  %1619 = vmatprep.mubr.msk.f32.mxu0 %vm247_vm0, %v184_v23  ;;  %v233_v58 = vld [vmem:[%s2020_s22 + $0x1d8] sm:$0xff]  ;;  %v234_v60 = vld [vmem:[%s2020_s22 + $0x1e0] sm:$0xff]  ;;  %v235_v62 = vld [vmem:[%s2020_s22 + $0x1e8] sm:$0xff] }
  0x24   : > { %1667 = vmatprep.mubr.msk.f32.mxu1 %vm247_vm0, %v216_v24  ;;  %v204_v63 = vld [vmem:[%s2020_s22 + $0xf0] sm:$0xff]  ;;  %v205_v1 = vld [vmem:[%s2020_s22 + $0xf8] sm:$0xff]  ;;  %v2153_v3 = vld [vmem:[%s2678_s2] ss:$0 sm:$0xff] }
  0x25   : > { %v236_v0 = vld [vmem:[%s2020_s22 + $0x1f0] sm:$0xff]  ;;  %v237_v2 = vld [vmem:[%s2020_s22 + $0x1f8] sm:$0xff] }
  0x26   : > { %1620 = vmatmul.mubr.msk.f32.gmra.mrb[10].mxu0 %vm247_vm0, %v185_v25 }
  0x27   : > { %1668 = vmatmul.mubr.msk.f32.gmra.mrb[10].mxu1 %vm247_vm0, %v217_v26  ;;  %1622 = vmatprep.mubr.msk.f32.mxu0 %vm247_vm0, %v186_v27 }
  0x28   : > { %1670 = vmatprep.mubr.msk.f32.mxu1 %vm247_vm0, %v218_v28 }
  0x2a   : > { %1623 = vmatmul.mubr.msk.f32.gmra.mrb[12].mxu0 %vm247_vm0, %v187_v29 }
  0x2b   : > { %1671 = vmatmul.mubr.msk.f32.gmra.mrb[12].mxu1 %vm247_vm0, %v219_v30  ;;  %1625 = vmatprep.mubr.msk.f32.mxu0 %vm247_vm0, %v188_v31 }
  0x2c   : > { %1673 = vmatprep.mubr.msk.f32.mxu1 %vm247_vm0, %v220_v32 }
  0x2e   : > { %1626 = vmatmul.mubr.msk.f32.gmra.mrb[14].mxu0 %vm247_vm0, %v189_v33 }
  0x2f   : > { %1674 = vmatmul.mubr.msk.f32.gmra.mrb[14].mxu1 %vm247_vm0, %v221_v34  ;;  %1628 = vmatprep.mubr.msk.f32.mxu0 %vm247_vm0, %v190_v35 }
  0x30   : > { %1676 = vmatprep.mubr.msk.f32.mxu1 %vm247_vm0, %v222_v36 }
  0x32   : > { %1629 = vmatmul.mubr.msk.f32.gmra.mrb[16].mxu0 %vm247_vm0, %v191_v37 }
  0x33   : > { %1677 = vmatmul.mubr.msk.f32.gmra.mrb[16].mxu1 %vm247_vm0, %v223_v38  ;;  %1631 = vmatprep.mubr.msk.f32.mxu0 %vm247_vm0, %v192_v39 }
  0x34   : > { %1679 = vmatprep.mubr.msk.f32.mxu1 %vm247_vm0, %v224_v40 }
  0x36   : > { %1632 = vmatmul.mubr.msk.f32.gmra.mrb[18].mxu0 %vm247_vm0, %v193_v41 }
  0x37   : > { %1680 = vmatmul.mubr.msk.f32.gmra.mrb[18].mxu1 %vm247_vm0, %v225_v42  ;;  %1634 = vmatprep.mubr.msk.f32.mxu0 %vm247_vm0, %v194_v43 }
  0x38   : > { %1682 = vmatprep.mubr.msk.f32.mxu1 %vm247_vm0, %v226_v44 }
  0x3a   : > { %1635 = vmatmul.mubr.msk.f32.gmra.mrb[20].mxu0 %vm247_vm0, %v195_v45 }
  0x3b   : > { %1683 = vmatmul.mubr.msk.f32.gmra.mrb[20].mxu1 %vm247_vm0, %v227_v46  ;;  %1637 = vmatprep.mubr.msk.f32.mxu0 %vm247_vm0, %v196_v47 }
  0x3c   : > { %1685 = vmatprep.mubr.msk.f32.mxu1 %vm247_vm0, %v228_v48 }
  0x3e   : > { %1638 = vmatmul.mubr.msk.f32.gmra.mrb[22].mxu0 %vm247_vm0, %v197_v49 }
  0x3f   : > { %1686 = vmatmul.mubr.msk.f32.gmra.mrb[22].mxu1 %vm247_vm0, %v229_v50  ;;  %1640 = vmatprep.mubr.msk.f32.mxu0 %vm247_vm0, %v198_v51 }
  0x40   : > { %1688 = vmatprep.mubr.msk.f32.mxu1 %vm247_vm0, %v230_v52 }
  0x42   : > { %1641 = vmatmul.mubr.msk.f32.gmra.mrb[24].mxu0 %vm247_vm0, %v199_v53 }
  0x43   : > { %1689 = vmatmul.mubr.msk.f32.gmra.mrb[24].mxu1 %vm247_vm0, %v231_v54  ;;  %1643 = vmatprep.mubr.msk.f32.mxu0 %vm247_vm0, %v200_v55 }
  0x44   : > { %1691 = vmatprep.mubr.msk.f32.mxu1 %vm247_vm0, %v232_v56 }
  0x46   : > { %1644 = vmatmul.mubr.msk.f32.gmra.mrb[26].mxu0 %vm247_vm0, %v201_v57 }
  0x47   : > { %1692 = vmatmul.mubr.msk.f32.gmra.mrb[26].mxu1 %vm247_vm0, %v233_v58  ;;  %1646 = vmatprep.mubr.msk.f32.mxu0 %vm247_vm0, %v202_v59 }
  0x48   : > { %1694 = vmatprep.mubr.msk.f32.mxu1 %vm247_vm0, %v234_v60 }
  0x4a   : > { %1647 = vmatmul.mubr.msk.f32.gmra.mrb[28].mxu0 %vm247_vm0, %v203_v61 }
  0x4b   : > { %1695 = vmatmul.mubr.msk.f32.gmra.mrb[28].mxu1 %vm247_vm0, %v235_v62  ;;  %1649 = vmatprep.mubr.msk.f32.mxu0 %vm247_vm0, %v204_v63 }
  0x4c   : > { %1697 = vmatprep.mubr.msk.f32.mxu1 %vm247_vm0, %v236_v0 }
  0x4e   : > { %1650 = vmatmul.mubr.msk.f32.gmra.mrb[30].mxu0 %vm247_vm0, %v205_v1 }
  0x4f   : > { %1698 = vmatmul.mubr.msk.f32.gmra.mrb[30].mxu1 %vm247_vm0, %v237_v2 }
  0xe5   : > { %v1606_v4 = vpop.f32.mrb[0].mxu0 }
  0xe6   : > { %v1654_v5 = vpop.f32.mrb[0].mxu1  ;;  %v2156_v6 = vadd.f32 %v1606_v4, %v2153_v3  ;;  %v506_v8 = vpop.f32.mrb[1].mxu0 }
  0xe7   : > { %v2159_v7 = vadd.f32 %v1654_v5, %v2153_v3  ;;  %v666_v9 = vpop.f32.mrb[1].mxu1  ;;  %v2162_v10 = vadd.f32 %v2153_v3, %v506_v8 }
  0xe8   : > { %v2165_v11 = vadd.f32 %v2153_v3, %v666_v9  ;;  %v1469_v12 = vmul.f32 -1.442695, %v2156_v6 }
  0xe9   : > { %v1501_v13 = vmul.f32 -1.442695, %v2159_v7  ;;  %v1468_v14 = vmul.f32 -1.442695, %v2162_v10  ;;  %v1609_v16 = vpop.f32.mrb[2].mxu0 }
  0xea   : > { %v1500_v15 = vmul.f32 -1.442695, %v2165_v11  ;;  %v1657_v17 = vpop.f32.mrb[2].mxu1  ;;  %1714 = vpow2.f32 %v1469_v12  ;;  %v2172_v18 = vadd.f32 %v1609_v16, %v2153_v3  ;;  %v516_v20 = vpop.f32.mrb[3].mxu0 }
  0xeb   : > { %v2175_v19 = vadd.f32 %v1657_v17, %v2153_v3  ;;  %v676_v21 = vpop.f32.mrb[3].mxu1  ;;  %1716 = vpow2.f32 %v1501_v13  ;;  %v2178_v22 = vadd.f32 %v2153_v3, %v516_v20 }
  0xec   : > { %v2181_v23 = vadd.f32 %v2153_v3, %v676_v21  ;;  %1718 = vpow2.f32 %v1468_v14  ;;  %v1471_v24 = vmul.f32 -1.442695, %v2172_v18 }
  0xed   : > { %v1503_v25 = vmul.f32 -1.442695, %v2175_v19  ;;  %1720 = vpow2.f32 %v1500_v15  ;;  %v1470_v26 = vmul.f32 -1.442695, %v2178_v22  ;;  %v1612_v28 = vpop.f32.mrb[4].mxu0 }
  0xee   : > { %v1502_v27 = vmul.f32 -1.442695, %v2181_v23  ;;  %v1660_v29 = vpop.f32.mrb[4].mxu1  ;;  %1722 = vpow2.f32 %v1471_v24  ;;  %v2188_v30 = vadd.f32 %v1612_v28, %v2153_v3  ;;  %v526_v32 = vpop.f32.mrb[5].mxu0 }
  0xef   : > { %v2191_v31 = vadd.f32 %v1660_v29, %v2153_v3  ;;  %v686_v33 = vpop.f32.mrb[5].mxu1  ;;  %1724 = vpow2.f32 %v1503_v25  ;;  %v2194_v34 = vadd.f32 %v2153_v3, %v526_v32 }
  0xf0   : > { %v2197_v35 = vadd.f32 %v2153_v3, %v686_v33  ;;  %1726 = vpow2.f32 %v1470_v26  ;;  %v1473_v36 = vmul.f32 -1.442695, %v2188_v30 }
  0xf1   : > { %v1505_v37 = vmul.f32 -1.442695, %v2191_v31  ;;  %1728 = vpow2.f32 %v1502_v27  ;;  %v1472_v38 = vmul.f32 -1.442695, %v2194_v34  ;;  %v1615_v40 = vpop.f32.mrb[6].mxu0 }
  0xf2   : > { %v1504_v39 = vmul.f32 -1.442695, %v2197_v35  ;;  %v1663_v41 = vpop.f32.mrb[6].mxu1  ;;  %1730 = vpow2.f32 %v1473_v36  ;;  %v2204_v42 = vadd.f32 %v1615_v40, %v2153_v3  ;;  %v536_v43 = vpop.f32.mrb[7].mxu0 }
  0xf3   : > { %v696_v44 = vpop.f32.mrb[7].mxu1  ;;  %1732 = vpow2.f32 %v1505_v37  ;;  %v2210_v12 = vadd.f32 %v1663_v41, %v2153_v3  ;;  %v2213_v15 = vadd.f32 %v2153_v3, %v536_v43 }
  0xf4   : > { %v1715_v45 = vpop.eup %1714  ;;  %1734 = vpow2.f32 %v1472_v38  ;;  %v1475_v46 = vmul.f32 -1.442695, %v2204_v42  ;;  %v2218_v21 = vadd.f32 %v2153_v3, %v696_v44 }
  0xf5   : > { %v1717_v47 = vpop.eup %1716  ;;  %v1018_v48 = vadd.f32 1.0, %v1715_v45  ;;  %1736 = vpow2.f32 %v1504_v39  ;;  %v1618_v49 = vpop.f32.mrb[8].mxu0  ;;  %v1507_v36 = vmul.f32 -1.442695, %v2210_v12  ;;  %v1474_v40 = vmul.f32 -1.442695, %v2213_v15 }
  0xf6   : > { %v1719_v50 = vpop.eup %1718  ;;  %v1050_v51 = vadd.f32 1.0, %v1717_v47  ;;  %1738 = vpow2.f32 %v1475_v46  ;;  %v1666_v52 = vpop.f32.mrb[8].mxu1  ;;  %v2225_v28 = vadd.f32 %v1618_v49, %v2153_v3  ;;  %v1506_v46 = vmul.f32 -1.442695, %v2218_v21 }
  0xf7   : > { %v546_v53 = vpop.f32.mrb[9].mxu0  ;;  %v1721_v54 = vpop.eup %1720  ;;  %1740 = vrcp.f32 %v1018_v48  ;;  %v1017_v55 = vadd.f32 1.0, %v1719_v50  ;;  %v2231_v37 = vadd.f32 %v1666_v52, %v2153_v3 }
  0xf8   : > { %v706_v56 = vpop.f32.mrb[9].mxu1  ;;  %v1723_v57 = vpop.eup %1722  ;;  %1742 = vrcp.f32 %v1050_v51  ;;  %v1049_v58 = vadd.f32 1.0, %v1721_v54  ;;  %v2242_v41 = vadd.f32 %v2153_v3, %v546_v53  ;;  %v1477_v52 = vmul.f32 -1.442695, %v2225_v28 }
  0xf9   : > { %v1725_v59 = vpop.eup %1724  ;;  %1744 = vrcp.f32 %v1017_v55  ;;  %v1020_v60 = vadd.f32 1.0, %v1723_v57  ;;  %v1621_v61 = vpop.f32.mrb[10].mxu0  ;;  %v2249_v47 = vadd.f32 %v2153_v3, %v706_v56  ;;  %v1509_v56 = vmul.f32 -1.442695, %v2231_v37 }
  0xfa   : > { %v1727_v62 = vpop.eup %1726  ;;  %1746 = vrcp.f32 %v1049_v58  ;;  %v1052_v63 = vadd.f32 1.0, %v1725_v59  ;;  %v1669_v0 = vpop.f32.mrb[10].mxu1  ;;  %v2258_v53 = vadd.f32 %v1621_v61, %v2153_v3  ;;  %v1476_v59 = vmul.f32 -1.442695, %v2242_v41 }
  0xfb   : > { %v556_v1 = vpop.f32.mrb[11].mxu0  ;;  %v1729_v2 = vpop.eup %1728  ;;  %1748 = vrcp.f32 %v1020_v60  ;;  %v1019_v4 = vadd.f32 1.0, %v1727_v62  ;;  %v2267_v57 = vadd.f32 %v1669_v0, %v2153_v3  ;;  %v1508_v0 = vmul.f32 -1.442695, %v2249_v47 }
  0xfc   : > { %v2207_v5 = vpop.f32.mrb[11].mxu1  ;;  %v1731_v8 = vpop.eup %1730  ;;  %1750 = vrcp.f32 %v1052_v63  ;;  %v1051_v9 = vadd.f32 1.0, %v1729_v2  ;;  %v2274_v60 = vadd.f32 %v2153_v3, %v556_v1 }
  0xfd   : > { %v1733_v13 = vpop.eup %1732  ;;  %1752 = vrcp.f32 %v1019_v4  ;;  %v1022_v14 = vadd.f32 1.0, %v1731_v8  ;;  %v2215_v16 = vpop.f32.mrb[12].mxu0 }
  0xfe   : > { %v1735_v17 = vpop.eup %1734  ;;  %1754 = vrcp.f32 %v1051_v9  ;;  %v1054_v20 = vadd.f32 1.0, %v1733_v13  ;;  %v2220_v24 = vpop.f32.mrb[12].mxu1  ;;  %v2298_v9 = vadd.f32 %v2215_v16, %v2153_v3  ;;  %v1478_v16 = vmul.f32 -1.442695, %v2274_v60 }
  0xff   : > { %v2222_v25 = vpop.f32.mrb[13].mxu0  ;;  %v1737_v26 = vpop.eup %1736  ;;  %1756 = vrcp.f32 %v1022_v14  ;;  %v1021_v27 = vadd.f32 1.0, %v1735_v17  ;;  %v1511_v14 = vmul.f32 -1.442695, %v2267_v57  ;;  %v2306_v17 = vadd.f32 %v2220_v24, %v2153_v3 }
 0x100   : > { %v2227_v29 = vpop.f32.mrb[13].mxu1  ;;  %v1739_v32 = vpop.eup %1738  ;;  %1758 = vrcp.f32 %v1054_v20  ;;  %v1053_v33 = vadd.f32 1.0, %v1737_v26 }
 0x101   : > { %v1741_v38 = vpop.eup %1740  ;;  %1760 = vrcp.f32 %v1021_v27  ;;  %v1024_v39 = vadd.f32 1.0, %v1739_v32  ;;  %v2244_v43 = vpop.f32.mrb[14].mxu0 }
 0x102   : > { %v1743_v44 = vpop.eup %1742  ;;  %v1210_v45 = vmul.f32 %v1741_v38, %v2156_v6  ;;  %1762 = vrcp.f32 %v1053_v33  ;;  %v2251_v48 = vpop.f32.mrb[14].mxu1  ;;  %v2322_v33 = vadd.f32 %v2153_v3, %v2222_v25 }
 0x103   : > { %v2253_v49 = vpop.f32.mrb[15].mxu0  ;;  %v1745_v50 = vpop.eup %1744  ;;  %v1242_v51 = vmul.f32 %v1743_v44, %v2159_v7  ;;  %1764 = vrcp.f32 %v1024_v39 }
 0x104   : > { %v2260_v6 = vpop.f32.mrb[15].mxu1  ;;  %v1747_v54 = vpop.eup %1746  ;;  %1275 = vst.msk [vmem:[%s2238_s27 + $0x8] sm:$0xff] %vm1273_vm1, %v1210_v45  ;;  %v1209_v55 = vmul.f32 %v1745_v50, %v2162_v10  ;;  %1766 = vpow2.f32 %v1507_v36  ;;  %v1513_v45 = vmul.f32 -1.442695, %v2306_v17 }
 0x105   : > { %v1749_v7 = vpop.eup %1748  ;;  %1307 = vst.msk [vmem:[%s2238_s27 + $0x108] sm:$0xff] %vm1273_vm1, %v1242_v51  ;;  %v1241_v58 = vmul.f32 %v1747_v54, %v2165_v11  ;;  %1768 = vpow2.f32 %v1474_v40  ;;  %v2276_v61 = vpop.f32.mrb[16].mxu0  ;;  %v2286_v11 = vadd.f32 %v2153_v3, %v2207_v5  ;;  %v1481_v40 = vmul.f32 -1.442695, %v2298_v9 }
 0x106   : > { %v2278_v10 = vpop.f32.mrb[16].mxu1  ;;  %v1751_v62 = vpop.eup %1750  ;;  %1274 = vst.msk [vmem:[%s2238_s27] sm:$0xff] %vm1273_vm1, %v1209_v55  ;;  %v1212_v63 = vmul.f32 %v1749_v7, %v2172_v18  ;;  %1770 = vpow2.f32 %v1506_v46  ;;  %v1479_v18 = vmul.f32 -1.442695, %v2258_v53  ;;  %v2343_v51 = vadd.f32 %v2153_v3, %v2227_v29 }
 0x107   : > { %v2288_v1 = vpop.f32.mrb[17].mxu0  ;;  %v2290_v2 = vpop.f32.mrb[17].mxu1  ;;  %1306 = vst.msk [vmem:[%s2238_s27 + $0x100] sm:$0xff] %vm1273_vm1, %v1241_v58  ;;  %v1244_v8 = vmul.f32 %v1751_v62, %v2175_v19  ;;  %1772 = vpow2.f32 %v1477_v52  ;;  %v1510_v32 = vmul.f32 -1.442695, %v2286_v11 }
 0x108   : > { %v1753_v4 = vpop.eup %1752  ;;  %1277 = vst.msk [vmem:[%s2238_s27 + $0x18] sm:$0xff] %vm1273_vm1, %v1212_v63  ;;  %1774 = vpow2.f32 %v1509_v56 }
 0x109   : > { %v1755_v5 = vpop.eup %1754  ;;  %v1211_v13 = vmul.f32 %v1753_v4, %v2178_v22  ;;  %1309 = vst.msk [vmem:[%s2238_s27 + $0x118] sm:$0xff] %vm1273_vm1, %v1244_v8  ;;  %1776 = vpow2.f32 %v1476_v59  ;;  %v2312_v26 = vpop.f32.mrb[18].mxu0 }
 0x10a   : > { %v1757_v19 = vpop.eup %1756  ;;  %v1243_v20 = vmul.f32 %v1755_v5, %v2181_v23  ;;  %v2314_v27 = vpop.f32.mrb[18].mxu1  ;;  %1778 = vpow2.f32 %v1508_v0  ;;  %v2362_v0 = vmul.f32 -1.442695, %v2322_v33  ;;  %v2368_v5 = vmul.f32 -1.442695, %v2343_v51 }
 0x10b   : > { %v1759_v22 = vpop.eup %1758  ;;  %1276 = vst.msk [vmem:[%s2238_s27 + $0x10] sm:$0xff] %vm1273_vm1, %v1211_v13  ;;  %v1214_v24 = vmul.f32 %v1757_v19, %v2188_v30  ;;  %v596_v23 = vpop.f32.mrb[19].mxu0  ;;  %1780 = vpow2.f32 %v1479_v18  ;;  %v2372_v13 = vadd.f32 %v2244_v43, %v2153_v3 }
 0x10c   : > { %v756_v36 = vpop.f32.mrb[19].mxu1  ;;  %v1761_v38 = vpop.eup %1760  ;;  %1308 = vst.msk [vmem:[%s2238_s27 + $0x110] sm:$0xff] %vm1273_vm1, %v1243_v20  ;;  %v1246_v39 = vmul.f32 %v1759_v22, %v2191_v31  ;;  %v2329_v30 = vadd.f32 %v2153_v3, %v596_v23  ;;  %1782 = vpow2.f32 %v1511_v14 }
 0x10d   : > { %v1763_v44 = vpop.eup %1762  ;;  %1279 = vst.msk [vmem:[%s2238_s27 + $0x28] sm:$0xff] %vm1273_vm1, %v1214_v24  ;;  %v1213_v25 = vmul.f32 %v1761_v38, %v2194_v34  ;;  %v2336_v46 = vadd.f32 %v2153_v3, %v756_v36  ;;  %1784 = vpow2.f32 %v1478_v16  ;;  %v1636_v52 = vpop.f32.mrb[20].mxu0  ;;  %v2376_v16 = vadd.f32 %v2251_v48, %v2153_v3 }
 0x10e   : > { %v1765_v31 = vpop.eup %1764  ;;  %1311 = vst.msk [vmem:[%s2238_s27 + $0x128] sm:$0xff] %vm1273_vm1, %v1246_v39  ;;  %v1245_v50 = vmul.f32 %v1763_v44, %v2197_v35  ;;  %v1684_v34 = vpop.f32.mrb[20].mxu1  ;;  %1786 = vpow2.f32 %v1510_v32  ;;  %v2349_v56 = vadd.f32 %v1636_v52, %v2153_v3  ;;  %v2389_v48 = vadd.f32 %v2153_v3, %v2253_v49 }
 0x10f   : > { %v1767_v54 = vpop.eup %1766  ;;  %1278 = vst.msk [vmem:[%s2238_s27 + $0x20] sm:$0xff] %vm1273_vm1, %v1213_v25  ;;  %v1216_v55 = vmul.f32 %v1765_v31, %v2204_v42  ;;  %v606_v7 = vpop.f32.mrb[21].mxu0  ;;  %1788 = vpow2.f32 %v1481_v40  ;;  %v2354_v29 = vadd.f32 %v1684_v34, %v2153_v3  ;;  %v2399_v52 = vadd.f32 %v2153_v3, %v2260_v6 }
 0x110   : > { %v766_v58 = vpop.f32.mrb[21].mxu1  ;;  %v1769_v35 = vpop.eup %1768  ;;  %1310 = vst.msk [vmem:[%s2238_s27 + $0x120] sm:$0xff] %vm1273_vm1, %v1245_v50  ;;  %v1056_v59 = vadd.f32 1.0, %v1767_v54  ;;  %v2357_v62 = vadd.f32 %v2153_v3, %v606_v7  ;;  %1790 = vpow2.f32 %v1513_v45  ;;  %v2395_v50 = vmul.f32 -1.442695, %v2372_v13 }
 0x111   : > { %v1771_v63 = vpop.eup %1770  ;;  %1281 = vst.msk [vmem:[%s2238_s27 + $0x38] sm:$0xff] %vm1273_vm1, %v1216_v55  ;;  %v1023_v42 = vadd.f32 1.0, %v1769_v35  ;;  %v2365_v4 = vadd.f32 %v2153_v3, %v766_v58  ;;  %v1639_v14 = vpop.f32.mrb[22].mxu0  ;;  %v2402_v49 = vmul.f32 -1.442695, %v2376_v16 }
 0x112   : > { %v1773_v8 = vpop.eup %1772  ;;  %1792 = vrcp.f32 %v1056_v59  ;;  %v1055_v18 = vadd.f32 1.0, %v1771_v63  ;;  %v2379_v22 = vadd.f32 %v1639_v14, %v2153_v3  ;;  %v1687_v24 = vpop.f32.mrb[22].mxu1 }
 0x113   : > { %v1775_v19 = vpop.eup %1774  ;;  %1794 = vrcp.f32 %v1023_v42  ;;  %v1026_v20 = vadd.f32 1.0, %v1773_v8  ;;  %v616_v32 = vpop.f32.mrb[23].mxu0  ;;  %v2382_v38 = vadd.f32 %v1687_v24, %v2153_v3 }
 0x114   : > { %v1777_v23 = vpop.eup %1776  ;;  %1796 = vrcp.f32 %v1055_v18  ;;  %v1058_v36 = vadd.f32 1.0, %v1775_v19  ;;  %v2385_v43 = vadd.f32 %v2153_v3, %v616_v32  ;;  %v776_v39 = vpop.f32.mrb[23].mxu1  ;;  %v2414_v19 = vmul.f32 -1.442695, %v2389_v48 }
 0x115   : > { %v1779_v40 = vpop.eup %1778  ;;  %1798 = vrcp.f32 %v1026_v20  ;;  %v1025_v44 = vadd.f32 1.0, %v1777_v23  ;;  %v2392_v25 = vadd.f32 %v2153_v3, %v776_v39  ;;  %v1642_v34 = vpop.f32.mrb[24].mxu0  ;;  %v2420_v23 = vmul.f32 -1.442695, %v2399_v52 }
 0x116   : > { %v1781_v45 = vpop.eup %1780  ;;  %1800 = vrcp.f32 %v1058_v36  ;;  %v1057_v31 = vadd.f32 1.0, %v1779_v40  ;;  %v2405_v7 = vadd.f32 %v1642_v34, %v2153_v3  ;;  %v1690_v58 = vpop.f32.mrb[24].mxu1  ;;  %v2424_v36 = vadd.f32 %v2276_v61, %v2153_v3 }
 0x117   : > { %v1783_v54 = vpop.eup %1782  ;;  %1802 = vrcp.f32 %v1025_v44  ;;  %v1028_v55 = vadd.f32 1.0, %v1781_v45  ;;  %v626_v35 = vpop.f32.mrb[25].mxu0  ;;  %v2408_v42 = vadd.f32 %v1690_v58, %v2153_v3  ;;  %v2428_v45 = vadd.f32 %v2278_v10, %v2153_v3 }
 0x118   : > { %v1785_v59 = vpop.eup %1784  ;;  %1804 = vrcp.f32 %v1057_v31  ;;  %v1060_v63 = vadd.f32 1.0, %v1783_v54  ;;  %v2411_v6 = vadd.f32 %v2153_v3, %v626_v35  ;;  %v786_v8 = vpop.f32.mrb[25].mxu1 }
 0x119   : > { %v1787_v18 = vpop.eup %1786  ;;  %1806 = vrcp.f32 %v1028_v55  ;;  %v1027_v14 = vadd.f32 1.0, %v1785_v59  ;;  %v2417_v20 = vadd.f32 %v2153_v3, %v786_v8  ;;  %v1645_v39 = vpop.f32.mrb[26].mxu0  ;;  %v2442_v8 = vadd.f32 %v2153_v3, %v2288_v1 }
 0x11a   : > { %v1789_v24 = vpop.eup %1788  ;;  %1808 = vrcp.f32 %v1060_v63  ;;  %v1059_v32 = vadd.f32 1.0, %v1787_v18  ;;  %v2431_v31 = vadd.f32 %v1645_v39, %v2153_v3  ;;  %v1693_v34 = vpop.f32.mrb[26].mxu1  ;;  %v2451_v39 = vadd.f32 %v2153_v3, %v2290_v2 }
 0x11b   : > { %v1791_v40 = vpop.eup %1790  ;;  %1810 = vrcp.f32 %v1027_v14  ;;  %v1030_v44 = vadd.f32 1.0, %v1789_v24  ;;  %v636_v54 = vpop.f32.mrb[27].mxu0  ;;  %v2434_v35 = vadd.f32 %v1693_v34, %v2153_v3  ;;  %v1517_v34 = vmul.f32 -1.442695, %v2428_v45 }
 0x11c   : > { %v1793_v55 = vpop.eup %1792  ;;  %1812 = vrcp.f32 %v1059_v32  ;;  %v1062_v58 = vadd.f32 1.0, %v1791_v40  ;;  %v2437_v61 = vadd.f32 %v2153_v3, %v636_v54  ;;  %v796_v59 = vpop.f32.mrb[27].mxu1  ;;  %v1485_v32 = vmul.f32 -1.442695, %v2424_v36 }
 0x11d   : > { %v1795_v63 = vpop.eup %1794  ;;  %v1248_v10 = vmul.f32 %v1793_v55, %v2210_v12  ;;  %1814 = vrcp.f32 %v1030_v44  ;;  %v2445_v18 = vadd.f32 %v2153_v3, %v796_v59  ;;  %v1648_v12 = vpop.f32.mrb[28].mxu0 }
 0x11e   : > { %v1797_v14 = vpop.eup %1796  ;;  %v1215_v24 = vmul.f32 %v1795_v63, %v2213_v15  ;;  %1816 = vrcp.f32 %v1062_v58  ;;  %v1696_v40 = vpop.f32.mrb[28].mxu1  ;;  %v2459_v15 = vadd.f32 %v1648_v12, %v2153_v3 }
 0x11f   : > { %v1799_v44 = vpop.eup %1798  ;;  %1313 = vst.msk [vmem:[%s2238_s27 + $0x138] sm:$0xff] %vm1273_vm1, %v1248_v10  ;;  %v1247_v1 = vmul.f32 %v1797_v14, %v2218_v21  ;;  %1818 = vpow2.f32 %v2362_v0  ;;  %v646_v54 = vpop.f32.mrb[29].mxu0  ;;  %v2466_v59 = vadd.f32 %v1696_v40, %v2153_v3  ;;  %v2477_v10 = vadd.f32 %v2312_v26, %v2153_v3 }
 0x120   : > { %v806_v55 = vpop.f32.mrb[29].mxu1  ;;  %v1801_v2 = vpop.eup %1800  ;;  %1280 = vst.msk [vmem:[%s2238_s27 + $0x30] sm:$0xff] %vm1273_vm1, %v1215_v24  ;;  %v1218_v58 = vmul.f32 %v1799_v44, %v2225_v28  ;;  %1820 = vpow2.f32 %v2368_v5  ;;  %v2469_v21 = vadd.f32 %v2153_v3, %v646_v54  ;;  %v1484_v24 = vmul.f32 -1.442695, %v2442_v8 }
 0x121   : > { %v1803_v0 = vpop.eup %1802  ;;  %1312 = vst.msk [vmem:[%s2238_s27 + $0x130] sm:$0xff] %vm1273_vm1, %v1247_v1  ;;  %v1250_v63 = vmul.f32 %v1801_v2, %v2231_v37  ;;  %1822 = vpow2.f32 %v2395_v50  ;;  %v2480_v28 = vadd.f32 %v2153_v3, %v806_v55  ;;  %v2489_v37 = vadd.f32 %v2314_v27, %v2153_v3  ;;  %v1651_v50 = vpop.f32.mrb[30].mxu0 }
 0x122   : > { %v1805_v5 = vpop.eup %1804  ;;  %1283 = vst.msk [vmem:[%s2238_s27 + $0x48] sm:$0xff] %vm1273_vm1, %v1218_v58  ;;  %v1217_v14 = vmul.f32 %v1803_v0, %v2242_v41  ;;  %1824 = vpow2.f32 %v2402_v49  ;;  %v1699_v26 = vpop.f32.mrb[30].mxu1  ;;  %v1516_v41 = vmul.f32 -1.442695, %v2451_v39  ;;  %v2497_v49 = vadd.f32 %v1651_v50, %v2153_v3 }
 0x123   : > { %v1807_v12 = vpop.eup %1806  ;;  %1315 = vst.msk [vmem:[%s2238_s27 + $0x148] sm:$0xff] %vm1273_vm1, %v1250_v63  ;;  %v1249_v40 = vmul.f32 %v1805_v5, %v2249_v47  ;;  %1826 = vpow2.f32 %v2414_v19  ;;  %v656_v44 = vpop.f32.mrb[31].mxu0  ;;  %v2504_v47 = vadd.f32 %v1699_v26, %v2153_v3  ;;  %v1487_v58 = vmul.f32 -1.442695, %v2477_v10 }
 0x124   : > { %v816_v1 = vpop.f32.mrb[31].mxu1  ;;  %v1809_v27 = vpop.eup %1808  ;;  %1282 = vst.msk [vmem:[%s2238_s27 + $0x40] sm:$0xff] %vm1273_vm1, %v1217_v14  ;;  %v1220_v54 = vmul.f32 %v1807_v12, %v2258_v53  ;;  %1828 = vpow2.f32 %v2420_v23  ;;  %v2507_v19 = vadd.f32 %v2153_v3, %v656_v44  ;;  %v1519_v63 = vmul.f32 -1.442695, %v2489_v37 }
 0x125   : > { %v1811_v55 = vpop.eup %1810  ;;  %1314 = vst.msk [vmem:[%s2238_s27 + $0x140] sm:$0xff] %vm1273_vm1, %v1249_v40  ;;  %v1252_v2 = vmul.f32 %v1809_v27, %v2267_v57  ;;  %1830 = vpow2.f32 %v1485_v32  ;;  %v2514_v53 = vadd.f32 %v2153_v3, %v816_v1  ;;  %v1486_v3 = vmul.f32 -1.442695, %v2329_v30 }
 0x126   : > { %v1813_v23 = vpop.eup %1812  ;;  %1285 = vst.msk [vmem:[%s2238_s27 + $0x58] sm:$0xff] %vm1273_vm1, %v1220_v54  ;;  %v1219_v0 = vmul.f32 %v1811_v55, %v2274_v60  ;;  %1832 = vpow2.f32 %v1517_v34 }
 0x127   : > { %v1815_v5 = vpop.eup %1814  ;;  %1317 = vst.msk [vmem:[%s2238_s27 + $0x158] sm:$0xff] %vm1273_vm1, %v1252_v2  ;;  %v1251_v57 = vmul.f32 %v1813_v23, %v2286_v11  ;;  %1834 = vpow2.f32 %v1484_v24 }
 0x128   : > { %v1817_v32 = vpop.eup %1816  ;;  %1284 = vst.msk [vmem:[%s2238_s27 + $0x50] sm:$0xff] %vm1273_vm1, %v1219_v0  ;;  %v1222_v14 = vmul.f32 %v1815_v5, %v2298_v9  ;;  %1836 = vpow2.f32 %v1516_v41 }
 0x129   : > { %v1819_v60 = vpop.eup %1818  ;;  %1316 = vst.msk [vmem:[%s2238_s27 + $0x150] sm:$0xff] %vm1273_vm1, %v1251_v57  ;;  %v1254_v34 = vmul.f32 %v1817_v32, %v2306_v17  ;;  %1838 = vpow2.f32 %v1487_v58 }
 0x12a   : > { %v1821_v50 = vpop.eup %1820  ;;  %1287 = vst.msk [vmem:[%s2238_s27 + $0x68] sm:$0xff] %vm1273_vm1, %v1222_v14  ;;  %v1029_v11 = vadd.f32 1.0, %v1819_v60  ;;  %1840 = vpow2.f32 %v1519_v63  ;;  %v1518_v60 = vmul.f32 -1.442695, %v2336_v46 }
 0x12b   : > { %v1823_v24 = vpop.eup %1822  ;;  %1319 = vst.msk [vmem:[%s2238_s27 + $0x168] sm:$0xff] %vm1273_vm1, %v1254_v34  ;;  %v1061_v26 = vadd.f32 1.0, %v1821_v50  ;;  %1842 = vpow2.f32 %v1486_v3 }
 0x12c   : > { %v1825_v12 = vpop.eup %1824  ;;  %1844 = vrcp.f32 %v1029_v11  ;;  %v1032_v9 = vadd.f32 1.0, %v1823_v24  ;;  %v1489_v11 = vmul.f32 -1.442695, %v2349_v56 }
 0x12d   : > { %v1827_v40 = vpop.eup %1826  ;;  %1846 = vrcp.f32 %v1061_v26  ;;  %v1064_v41 = vadd.f32 1.0, %v1825_v12  ;;  %v1521_v12 = vmul.f32 -1.442695, %v2354_v29 }
 0x12e   : > { %v1829_v44 = vpop.eup %1828  ;;  %1848 = vrcp.f32 %v1032_v9  ;;  %v1031_v17 = vadd.f32 1.0, %v1827_v40 }
 0x12f   : > { %v1831_v1 = vpop.eup %1830  ;;  %1850 = vrcp.f32 %v1064_v41  ;;  %v1063_v27 = vadd.f32 1.0, %v1829_v44  ;;  %v1488_v41 = vmul.f32 -1.442695, %v2357_v62 }
 0x130   : > { %v1833_v54 = vpop.eup %1832  ;;  %1852 = vrcp.f32 %v1031_v17  ;;  %v1034_v55 = vadd.f32 1.0, %v1831_v1  ;;  %v1520_v1 = vmul.f32 -1.442695, %v2365_v4 }
 0x131   : > { %v1835_v2 = vpop.eup %1834  ;;  %1854 = vrcp.f32 %v1063_v27  ;;  %v1066_v58 = vadd.f32 1.0, %v1833_v54 }
 0x132   : > { %v1837_v23 = vpop.eup %1836  ;;  %1856 = vrcp.f32 %v1034_v55  ;;  %v1033_v0 = vadd.f32 1.0, %v1835_v2 }
 0x133   : > { %v1839_v63 = vpop.eup %1838  ;;  %1858 = vrcp.f32 %v1066_v58  ;;  %v1065_v5 = vadd.f32 1.0, %v1837_v23 }
 0x134   : > { %v1841_v57 = vpop.eup %1840  ;;  %1860 = vrcp.f32 %v1033_v0  ;;  %v1036_v3 = vadd.f32 1.0, %v1839_v63 }
 0x135   : > { %v1843_v32 = vpop.eup %1842  ;;  %1862 = vrcp.f32 %v1065_v5  ;;  %v1068_v14 = vadd.f32 1.0, %v1841_v57 }
 0x136   : > { %v1845_v34 = vpop.eup %1844  ;;  %1864 = vrcp.f32 %v1036_v3  ;;  %v1035_v50 = vadd.f32 1.0, %v1843_v32 }
 0x137   : > { %v1847_v24 = vpop.eup %1846  ;;  %v1221_v26 = vmul.f32 %v1845_v34, %v2322_v33  ;;  %1866 = vrcp.f32 %v1068_v14 }
 0x138   : > { %v1849_v9 = vpop.eup %1848  ;;  %v1253_v40 = vmul.f32 %v1847_v24, %v2343_v51  ;;  %1868 = vrcp.f32 %v1035_v50  ;;  %v1491_v51 = vmul.f32 -1.442695, %v2379_v22 }
 0x139   : > { %v1851_v44 = vpop.eup %1850  ;;  %1286 = vst.msk [vmem:[%s2238_s27 + $0x60] sm:$0xff] %vm1273_vm1, %v1221_v26  ;;  %v1224_v17 = vmul.f32 %v1849_v9, %v2372_v13  ;;  %1870 = vpow2.f32 %v1518_v60  ;;  %v1523_v13 = vmul.f32 -1.442695, %v2382_v38 }
 0x13a   : > { %v1853_v33 = vpop.eup %1852  ;;  %1318 = vst.msk [vmem:[%s2238_s27 + $0x160] sm:$0xff] %vm1273_vm1, %v1253_v40  ;;  %v1256_v27 = vmul.f32 %v1851_v44, %v2376_v16  ;;  %1872 = vpow2.f32 %v1489_v11  ;;  %v1490_v16 = vmul.f32 -1.442695, %v2385_v43 }
 0x13b   : > { %v1855_v54 = vpop.eup %1854  ;;  %1289 = vst.msk [vmem:[%s2238_s27 + $0x78] sm:$0xff] %vm1273_vm1, %v1224_v17  ;;  %v1223_v55 = vmul.f32 %v1853_v33, %v2389_v48  ;;  %1874 = vpow2.f32 %v1521_v12  ;;  %v1522_v48 = vmul.f32 -1.442695, %v2392_v25 }
 0x13c   : > { %v1857_v2 = vpop.eup %1856  ;;  %1321 = vst.msk [vmem:[%s2238_s27 + $0x178] sm:$0xff] %vm1273_vm1, %v1256_v27  ;;  %v1255_v58 = vmul.f32 %v1855_v54, %v2399_v52  ;;  %1876 = vpow2.f32 %v1488_v41  ;;  %v1493_v52 = vmul.f32 -1.442695, %v2405_v7 }
 0x13d   : > { %v1859_v23 = vpop.eup %1858  ;;  %1288 = vst.msk [vmem:[%s2238_s27 + $0x70] sm:$0xff] %vm1273_vm1, %v1223_v55  ;;  %v1226_v0 = vmul.f32 %v1857_v2, %v2424_v36  ;;  %1878 = vpow2.f32 %v1520_v1  ;;  %v1525_v36 = vmul.f32 -1.442695, %v2408_v42 }
 0x13e   : > { %v1861_v63 = vpop.eup %1860  ;;  %1320 = vst.msk [vmem:[%s2238_s27 + $0x170] sm:$0xff] %vm1273_vm1, %v1255_v58  ;;  %v1258_v5 = vmul.f32 %v1859_v23, %v2428_v45  ;;  %1880 = vpow2.f32 %v1491_v51  ;;  %v1492_v45 = vmul.f32 -1.442695, %v2411_v6 }
 0x13f   : > { %v1863_v57 = vpop.eup %1862  ;;  %1291 = vst.msk [vmem:[%s2238_s27 + $0x88] sm:$0xff] %vm1273_vm1, %v1226_v0  ;;  %v1225_v3 = vmul.f32 %v1861_v63, %v2442_v8  ;;  %1882 = vpow2.f32 %v1523_v13  ;;  %v1524_v8 = vmul.f32 -1.442695, %v2417_v20 }
 0x140   : > { %v1865_v32 = vpop.eup %1864  ;;  %1323 = vst.msk [vmem:[%s2238_s27 + $0x188] sm:$0xff] %vm1273_vm1, %v1258_v5  ;;  %v1257_v14 = vmul.f32 %v1863_v57, %v2451_v39  ;;  %1884 = vpow2.f32 %v1490_v16  ;;  %v1495_v5 = vmul.f32 -1.442695, %v2431_v31 }
 0x141   : > { %v1867_v60 = vpop.eup %1866  ;;  %1290 = vst.msk [vmem:[%s2238_s27 + $0x80] sm:$0xff] %vm1273_vm1, %v1225_v3  ;;  %v1228_v34 = vmul.f32 %v1865_v32, %v2477_v10  ;;  %1886 = vpow2.f32 %v1522_v48  ;;  %v1527_v3 = vmul.f32 -1.442695, %v2434_v35 }
 0x142   : > { %v1869_v50 = vpop.eup %1868  ;;  %1322 = vst.msk [vmem:[%s2238_s27 + $0x180] sm:$0xff] %vm1273_vm1, %v1257_v14  ;;  %v1260_v11 = vmul.f32 %v1867_v60, %v2489_v37  ;;  %1888 = vpow2.f32 %v1493_v52  ;;  %v1494_v14 = vmul.f32 -1.442695, %v2437_v61 }
 0x143   : > { %v1871_v39 = vpop.eup %1870  ;;  %1293 = vst.msk [vmem:[%s2238_s27 + $0x98] sm:$0xff] %vm1273_vm1, %v1228_v34  ;;  %v1227_v24 = vmul.f32 %v1869_v50, %v2329_v30  ;;  %1890 = vpow2.f32 %v1525_v36  ;;  %v1526_v34 = vmul.f32 -1.442695, %v2445_v18 }
 0x144   : > { %v1873_v26 = vpop.eup %1872  ;;  %1325 = vst.msk [vmem:[%s2238_s27 + $0x198] sm:$0xff] %vm1273_vm1, %v1260_v11  ;;  %v1067_v10 = vadd.f32 1.0, %v1871_v39  ;;  %1892 = vpow2.f32 %v1492_v45  ;;  %v1497_v11 = vmul.f32 -1.442695, %v2459_v15 }
 0x145   : > { %v1875_v12 = vpop.eup %1874  ;;  %1292 = vst.msk [vmem:[%s2238_s27 + $0x90] sm:$0xff] %vm1273_vm1, %v1227_v24  ;;  %v1038_v9 = vadd.f32 1.0, %v1873_v26  ;;  %1894 = vpow2.f32 %v1524_v8 }
 0x146   : > { %v1877_v40 = vpop.eup %1876  ;;  %1896 = vrcp.f32 %v1067_v10  ;;  %v1070_v37 = vadd.f32 1.0, %v1875_v12 }
 0x147   : > { %v1879_v41 = vpop.eup %1878  ;;  %1898 = vrcp.f32 %v1038_v9  ;;  %v1037_v44 = vadd.f32 1.0, %v1877_v40 }
 0x148   : > { %v1881_v17 = vpop.eup %1880  ;;  %1900 = vrcp.f32 %v1070_v37  ;;  %v1069_v30 = vadd.f32 1.0, %v1879_v41 }
 0x149   : > { %v1883_v1 = vpop.eup %1882  ;;  %1902 = vrcp.f32 %v1037_v44  ;;  %v1040_v33 = vadd.f32 1.0, %v1881_v17 }
 0x14a   : > { %v1885_v27 = vpop.eup %1884  ;;  %1904 = vrcp.f32 %v1069_v30  ;;  %v1072_v51 = vadd.f32 1.0, %v1883_v1 }
 0x14b   : > { %v1887_v54 = vpop.eup %1886  ;;  %1906 = vrcp.f32 %v1040_v33  ;;  %v1039_v55 = vadd.f32 1.0, %v1885_v27 }
 0x14c   : > { %v1889_v13 = vpop.eup %1888  ;;  %1908 = vrcp.f32 %v1072_v51  ;;  %v1071_v2 = vadd.f32 1.0, %v1887_v54 }
 0x14d   : > { %v1891_v58 = vpop.eup %1890  ;;  %1910 = vrcp.f32 %v1039_v55  ;;  %v1042_v16 = vadd.f32 1.0, %v1889_v13 }
 0x14e   : > { %v1893_v23 = vpop.eup %1892  ;;  %1912 = vrcp.f32 %v1071_v2  ;;  %v1074_v0 = vadd.f32 1.0, %v1891_v58 }
 0x14f   : > { %v1895_v48 = vpop.eup %1894  ;;  %1914 = vrcp.f32 %v1042_v16  ;;  %v1041_v63 = vadd.f32 1.0, %v1893_v23 }
 0x150   : > { %v1897_v52 = vpop.eup %1896  ;;  %1916 = vrcp.f32 %v1074_v0  ;;  %v1073_v57 = vadd.f32 1.0, %v1895_v48 }
 0x151   : > { %v1899_v36 = vpop.eup %1898  ;;  %v1259_v32 = vmul.f32 %v1897_v52, %v2336_v46  ;;  %1918 = vrcp.f32 %v1041_v63 }
 0x152   : > { %v1901_v45 = vpop.eup %1900  ;;  %v1230_v60 = vmul.f32 %v1899_v36, %v2349_v56  ;;  %1920 = vrcp.f32 %v1073_v57  ;;  %v1529_v56 = vmul.f32 -1.442695, %v2466_v59 }
 0x153   : > { %v1903_v8 = vpop.eup %1902  ;;  %1324 = vst.msk [vmem:[%s2238_s27 + $0x190] sm:$0xff] %vm1273_vm1, %v1259_v32  ;;  %v1262_v50 = vmul.f32 %v1901_v45, %v2354_v29  ;;  %1922 = vpow2.f32 %v1495_v5  ;;  %v1496_v29 = vmul.f32 -1.442695, %v2469_v21 }
 0x154   : > { %v1905_v46 = vpop.eup %1904  ;;  %1295 = vst.msk [vmem:[%s2238_s27 + $0xa8] sm:$0xff] %vm1273_vm1, %v1230_v60  ;;  %v1229_v39 = vmul.f32 %v1903_v8, %v2357_v62  ;;  %1924 = vpow2.f32 %v1527_v3  ;;  %v1528_v62 = vmul.f32 -1.442695, %v2480_v28 }
 0x155   : > { %v1907_v24 = vpop.eup %1906  ;;  %1327 = vst.msk [vmem:[%s2238_s27 + $0x1a8] sm:$0xff] %vm1273_vm1, %v1262_v50  ;;  %v1261_v26 = vmul.f32 %v1905_v46, %v2365_v4  ;;  %1926 = vpow2.f32 %v1494_v14  ;;  %v1499_v4 = vmul.f32 -1.442695, %v2497_v49 }
 0x156   : > { %v1909_v10 = vpop.eup %1908  ;;  %1294 = vst.msk [vmem:[%s2238_s27 + $0xa0] sm:$0xff] %vm1273_vm1, %v1229_v39  ;;  %v1232_v12 = vmul.f32 %v1907_v24, %v2379_v22  ;;  %1928 = vpow2.f32 %v1526_v34  ;;  %v1531_v22 = vmul.f32 -1.442695, %v2504_v47 }
 0x157   : > { %v1911_v9 = vpop.eup %1910  ;;  %1326 = vst.msk [vmem:[%s2238_s27 + $0x1a0] sm:$0xff] %vm1273_vm1, %v1261_v26  ;;  %v1264_v40 = vmul.f32 %v1909_v10, %v2382_v38  ;;  %1930 = vpow2.f32 %v1497_v11  ;;  %v1498_v38 = vmul.f32 -1.442695, %v2507_v19 }
 0x158   : > { %v1913_v37 = vpop.eup %1912  ;;  %1297 = vst.msk [vmem:[%s2238_s27 + $0xb8] sm:$0xff] %vm1273_vm1, %v1232_v12  ;;  %v1231_v41 = vmul.f32 %v1911_v9, %v2385_v43  ;;  %1932 = vpow2.f32 %v1529_v56  ;;  %v1530_v43 = vmul.f32 -1.442695, %v2514_v53 }
 0x159   : > { %v1915_v44 = vpop.eup %1914  ;;  %1329 = vst.msk [vmem:[%s2238_s27 + $0x1b8] sm:$0xff] %vm1273_vm1, %v1264_v40  ;;  %v1263_v17 = vmul.f32 %v1913_v37, %v2392_v25  ;;  %1934 = vpow2.f32 %v1496_v29 }
 0x15a   : > { %v1917_v30 = vpop.eup %1916  ;;  %1296 = vst.msk [vmem:[%s2238_s27 + $0xb0] sm:$0xff] %vm1273_vm1, %v1231_v41  ;;  %v1234_v1 = vmul.f32 %v1915_v44, %v2405_v7  ;;  %1936 = vpow2.f32 %v1528_v62 }
 0x15b   : > { %v1919_v33 = vpop.eup %1918  ;;  %1328 = vst.msk [vmem:[%s2238_s27 + $0x1b0] sm:$0xff] %vm1273_vm1, %v1263_v17  ;;  %v1266_v27 = vmul.f32 %v1917_v30, %v2408_v42  ;;  %1938 = vpow2.f32 %v1499_v4 }
 0x15c   : > { %v1921_v25 = vpop.eup %1920  ;;  %1299 = vst.msk [vmem:[%s2238_s27 + $0xc8] sm:$0xff] %vm1273_vm1, %v1234_v1  ;;  %v1233_v51 = vmul.f32 %v1919_v33, %v2411_v6  ;;  %1940 = vpow2.f32 %v1531_v22 }
 0x15d   : > { %v1923_v54 = vpop.eup %1922  ;;  %1331 = vst.msk [vmem:[%s2238_s27 + $0x1c8] sm:$0xff] %vm1273_vm1, %v1266_v27  ;;  %v1265_v7 = vmul.f32 %v1921_v25, %v2417_v20  ;;  %1942 = vpow2.f32 %v1498_v38 }
 0x15e   : > { %v1925_v55 = vpop.eup %1924  ;;  %1298 = vst.msk [vmem:[%s2238_s27 + $0xc0] sm:$0xff] %vm1273_vm1, %v1233_v51  ;;  %v1044_v13 = vadd.f32 1.0, %v1923_v54  ;;  %1944 = vpow2.f32 %v1530_v43 }
 0x15f   : > { %v1927_v2 = vpop.eup %1926  ;;  %1330 = vst.msk [vmem:[%s2238_s27 + $0x1c0] sm:$0xff] %vm1273_vm1, %v1265_v7  ;;  %v1076_v42 = vadd.f32 1.0, %v1925_v55 }
 0x160   : > { %v1929_v58 = vpop.eup %1928  ;;  %1946 = vrcp.f32 %v1044_v13  ;;  %v1043_v16 = vadd.f32 1.0, %v1927_v2 }
 0x161   : > { %v1931_v6 = vpop.eup %1930  ;;  %1948 = vrcp.f32 %v1076_v42  ;;  %v1075_v23 = vadd.f32 1.0, %v1929_v58 }
 0x162   : > { %v1933_v0 = vpop.eup %1932  ;;  %1950 = vrcp.f32 %v1043_v16  ;;  %v1046_v48 = vadd.f32 1.0, %v1931_v6 }
 0x163   : > { %v1935_v20 = vpop.eup %1934  ;;  %1952 = vrcp.f32 %v1075_v23  ;;  %v1078_v63 = vadd.f32 1.0, %v1933_v0 }
 0x164   : > { %v1937_v5 = vpop.eup %1936  ;;  %1954 = vrcp.f32 %v1046_v48  ;;  %v1045_v52 = vadd.f32 1.0, %v1935_v20 }
 0x165   : > { %v1939_v57 = vpop.eup %1938  ;;  %1956 = vrcp.f32 %v1078_v63  ;;  %v1077_v3 = vadd.f32 1.0, %v1937_v5 }
 0x166   : > { %v1941_v36 = vpop.eup %1940  ;;  %1958 = vrcp.f32 %v1045_v52  ;;  %v1048_v32 = vadd.f32 1.0, %v1939_v57 }
 0x167   : > { %v1943_v14 = vpop.eup %1942  ;;  %1960 = vrcp.f32 %v1077_v3  ;;  %v1080_v45 = vadd.f32 1.0, %v1941_v36 }
 0x168   : > { %v1945_v60 = vpop.eup %1944  ;;  %1962 = vrcp.f32 %v1048_v32  ;;  %v1047_v34 = vadd.f32 1.0, %v1943_v14 }
 0x169   : > { %1964 = vrcp.f32 %v1080_v45  ;;  %v1079_v8 = vadd.f32 1.0, %v1945_v60 }
 0x16a   : > { %v1947_v50 = vpop.eup %1946  ;;  %1966 = vrcp.f32 %v1047_v34 }
 0x16b   : > { %v1949_v11 = vpop.eup %1948  ;;  %v1236_v46 = vmul.f32 %v1947_v50, %v2431_v31  ;;  %1968 = vrcp.f32 %v1079_v8 }
 0x16c   : > { %v1951_v39 = vpop.eup %1950  ;;  %v1268_v56 = vmul.f32 %v1949_v11, %v2434_v35 }
 0x16d   : > { %v1953_v24 = vpop.eup %1952  ;;  %1301 = vst.msk [vmem:[%s2238_s27 + $0xd8] sm:$0xff] %vm1273_vm1, %v1236_v46  ;;  %v1235_v26 = vmul.f32 %v1951_v39, %v2437_v61 }
 0x16e   : > { %v1955_v29 = vpop.eup %1954  ;;  %1333 = vst.msk [vmem:[%s2238_s27 + $0x1d8] sm:$0xff] %vm1273_vm1, %v1268_v56  ;;  %v1267_v10 = vmul.f32 %v1953_v24, %v2445_v18 }
 0x16f   : > { %v1957_v12 = vpop.eup %1956  ;;  %1300 = vst.msk [vmem:[%s2238_s27 + $0xd0] sm:$0xff] %vm1273_vm1, %v1235_v26  ;;  %v1238_v31 = vmul.f32 %v1955_v29, %v2459_v15 }
 0x170   : > { %v1959_v62 = vpop.eup %1958  ;;  %1332 = vst.msk [vmem:[%s2238_s27 + $0x1d0] sm:$0xff] %vm1273_vm1, %v1267_v10  ;;  %v1270_v35 = vmul.f32 %v1957_v12, %v2466_v59 }
 0x171   : > { %v1961_v61 = vpop.eup %1960  ;;  %1303 = vst.msk [vmem:[%s2238_s27 + $0xe8] sm:$0xff] %vm1273_vm1, %v1238_v31  ;;  %v1237_v9 = vmul.f32 %v1959_v62, %v2469_v21 }
 0x172   : > { %v1963_v18 = vpop.eup %1962  ;;  %1335 = vst.msk [vmem:[%s2238_s27 + $0x1e8] sm:$0xff] %vm1273_vm1, %v1270_v35  ;;  %v1269_v40 = vmul.f32 %v1961_v61, %v2480_v28 }
 0x173   : > { %v1965_v15 = vpop.eup %1964  ;;  %1302 = vst.msk [vmem:[%s2238_s27 + $0xe0] sm:$0xff] %vm1273_vm1, %v1237_v9  ;;  %v1240_v4 = vmul.f32 %v1963_v18, %v2497_v49 }
 0x174   : > { %v1967_v37 = vpop.eup %1966  ;;  %1334 = vst.msk [vmem:[%s2238_s27 + $0x1e0] sm:$0xff] %vm1273_vm1, %v1269_v40  ;;  %v1272_v59 = vmul.f32 %v1965_v15, %v2504_v47 }
 0x175   : > { %v1969_v41 = vpop.eup %1968  ;;  %1305 = vst.msk [vmem:[%s2238_s27 + $0xf8] sm:$0xff] %vm1273_vm1, %v1240_v4  ;;  %v1239_v21 = vmul.f32 %v1967_v37, %v2507_v19 }
 0x176   : > { %1337 = vst.msk [vmem:[%s2238_s27 + $0x1f8] sm:$0xff] %vm1273_vm1, %v1272_v59  ;;  %v1271_v22 = vmul.f32 %v1969_v41, %v2514_v53 }
 0x177   : > { %1304 = vst.msk [vmem:[%s2238_s27 + $0xf0] sm:$0xff] %vm1273_vm1, %v1239_v21 }
 0x178   : > { %1336 = vst.msk [vmem:[%s2238_s27 + $0x1f0] sm:$0xff] %vm1273_vm1, %v1271_v22 }
 0x179 PF: > { %s13_s12 = sadd.s32 1, %s1976_s12  }
 0x17a   : > { %p10_p4 = scmp.ge.s32.totalorder %s13_s12, 6  }
 0x17c   :  { %12 = sbr.rel (!%p10_p4) target bundleno = 1 (0x1), region = 62 }

</bundles_post_ra>
